<compile_context>
chip_gen: v5e
topology: v5e:2x2
jax: 0.10.0
libtpu: 0.0.40
codegen_flags: <defaults>
</compile_context>

<pallas_src>
import functools

import jax
import jax.numpy as jnp
from jax.experimental import pallas as pl
from jax.experimental.pallas import tpu as pltpu

EPS = 1e-5
_VMEM_LIMIT = 48 * 1024 * 1024        # explicit; leaves headroom on v7x (64 MiB phys)
_BLOCK_BUDGET = 12 * 1024 * 1024      # per-grid-step activation/output block budget


def _round_up(x, m):
    return (x + m - 1) // m * m


def _stacked_conv(x, w, K, V, TV_al):
    """One deep MXU matmul: y (Cout, TV_al) f32 = w (Cout,K*Cin) @ stack (K*Cin,TV_al).

    `x` is one padded sample (Cin, TVp_al) bf16; the K temporal taps become K
    lane-shifted slices concatenated along the contraction axis (no HBM im2col).
    """
    stack = jnp.concatenate([x[:, k * V:k * V + TV_al] for k in range(K)], axis=0)
    return jnp.dot(w, stack, preferred_element_type=jnp.float32)


def _stats_kernel(x_ref, w_ref, sum_ref, sq_ref, *, K, V, B, TV_al):
    """Pass 1: accumulate elementwise conv output / its square into resident blocks.

    No in-kernel cross-lane reductions; the per-channel reduce is done on host once.
    """
    @pl.when(pl.program_id(1) == 0)
    def _():
        sum_ref[...] = jnp.zeros_like(sum_ref)
        sq_ref[...] = jnp.zeros_like(sq_ref)

    w = w_ref[...]                                        # (Cout, K*Cin) bf16
    s = jnp.zeros(sum_ref.shape, jnp.float32)
    q = jnp.zeros(sq_ref.shape, jnp.float32)
    for b in range(B):                                    # static, small
        y = _stacked_conv(x_ref[b], w, K, V, TV_al)       # (Cout, TV_al) f32
        s = s + y
        q = q + y * y
    sum_ref[...] += s
    sq_ref[...] += q


def _apply_kernel(x_ref, w_ref, scale_ref, shift_ref, out_ref, *, K, V, B, TV_al):
    """Pass 2: recompute the (cheap) conv and apply the folded BN scale/shift."""
    w = w_ref[...]                                        # (Cout, K*Cin) bf16
    scale = scale_ref[...]                                # (Cout, 1) f32
    shift = shift_ref[...]                                # (Cout, 1) f32
    for b in range(B):                                    # static, small
        y = _stacked_conv(x_ref[b], w, K, V, TV_al)       # (Cout, TV_al) f32
        out_ref[b] = (y * scale + shift).astype(out_ref.dtype)


def unit_skip_forward(x, w, bias, gamma, beta, kernel_size=9, stride=1,
                      out_dtype=jnp.float32):
    """x: (N, C_in, T, V) f32 NCHW. w: (C_out, C_in, K, 1). Returns (N, C_out, T_out, V)."""
    # Conv bias is mathematically cancelled by training-mode BN (mean subtraction),
    # so it is not used in the fused kernels (forward output is unchanged).
    del bias
    # TODO(synk): stride > 1 needs a strided shifted-slice path; the module default
    # (stride=1) is what this fused kernel implements.
    assert stride == 1, "unit_skip Pallas kernel currently supports stride=1 only"

    N, Cin, T, V = x.shape
    Cout = w.shape[0]
    K = kernel_size
    pad = (K - 1) // 2
    T_out = T + 2 * pad - K + 1                 # == T for odd K, stride 1
    TV = T_out * V                              # real output lane width per sample
    TV_al = _round_up(TV, 128)                  # lane-dense (unmasked vst) width
    TVp = (T + 2 * pad) * V                     # raw padded input lane width
    TVp_al = _round_up((K - 1) * V + TV_al, 128)  # covers every shifted slice
    M = N * TV                                  # BN reduction size

    # ---- host glue: cast -> bf16, temporal zero-pad, flatten (T,V) -> lanes, lane-pad.
    # One fused XLA pad/cast pass; no transposes.
    # TODO(synk): fuse the pad/cast into the producer of x to avoid this extra HBM pass.
    x_b = jnp.pad(x.astype(jnp.bfloat16),
                  ((0, 0), (0, 0), (pad, pad), (0, 0))).reshape(N, Cin, TVp)
    if TVp_al > TVp:
        x_b = jnp.pad(x_b, ((0, 0), (0, 0), (0, TVp_al - TVp)))
    # (Cout, Cin, K) -> (Cout, K, Cin) -> (Cout, K*Cin): rows match the in-kernel stack.
    w2 = jnp.transpose(w[..., 0], (0, 2, 1)).reshape(Cout, K * Cin).astype(jnp.bfloat16)

    # ---- per-step block sizing (re-derived per shape; keeps v7x's 64 MiB VMEM safe).
    per_sample = (2 * Cin * TVp_al * 2          # x block, double-buffered
                  + 2 * Cout * TV_al * 4        # out block, double-buffered
                  + K * Cin * TV_al * 2         # stacked bf16 operand
                  + Cout * TV_al * 4)           # f32 conv result
    def pick_b(n):
        best = 1
        for b in range(1, min(n, 8) + 1):
            if n % b == 0 and b * per_sample <= _BLOCK_BUDGET:
                best = b
        return best

    conv_flops = 2 * M * Cin * K * Cout
    x_bytes = int(x_b.size) * 2
    w_bytes = Cout * K * Cin * 2
    out_itemsize = jnp.dtype(out_dtype).itemsize

    # ---- pass 1: per-channel batch statistics (elementwise partials, host reduce) ----
    G = 2 if N % 2 == 0 else 1                  # megacore-shardable axis for v7x
    Np = N // G
    B1 = pick_b(Np)
    S = Np // B1

    sums, sqs = pl.pallas_call(
        functools.partial(_stats_kernel, K=K, V=V, B=B1, TV_al=TV_al),
        grid=(G, S),
        in_specs=[
            pl.BlockSpec((B1, Cin, TVp_al), lambda g, s: (g * S + s, 0, 0)),
            pl.BlockSpec((Cout, K * Cin), lambda g, s: (0, 0)),
        ],
        out_specs=[
            pl.BlockSpec((None, Cout, TV_al), lambda g, s: (g, 0, 0)),
            pl.BlockSpec((None, Cout, TV_al), lambda g, s: (g, 0, 0)),
        ],
        out_shape=[
            jax.ShapeDtypeStruct((G, Cout, TV_al), jnp.float32),
            jax.ShapeDtypeStruct((G, Cout, TV_al), jnp.float32),
        ],
        compiler_params=pltpu.CompilerParams(
            dimension_semantics=("parallel", "arbitrary"),
            vmem_limit_bytes=_VMEM_LIMIT),
        cost_estimate=pl.CostEstimate(
            flops=conv_flops, transcendentals=0,
            bytes_accessed=x_bytes + w_bytes + 2 * G * Cout * TV_al * 4),
    )(x_b, w2)

    # ---- fold BN into per-channel scale/shift (tiny host-side f32 math) ------------
    # Padded lane columns ([TV:TV_al]) are stripped before the reduce, so they never
    # contaminate the statistics.
    s_ch = jnp.sum(sums[..., :TV], axis=(0, 2))                    # (Cout,)
    q_ch = jnp.sum(sqs[..., :TV], axis=(0, 2))
    gamma_f = gamma.astype(jnp.float32)
    beta_f = beta.astype(jnp.float32)
    mean = s_ch / float(M)
    var = jnp.maximum(q_ch / float(M) - mean * mean, 0.0)
    inv = jax.lax.rsqrt(var + EPS)
    scale = (gamma_f * inv).reshape(Cout, 1)
    shift = (beta_f - mean * gamma_f * inv).reshape(Cout, 1)

    # ---- pass 2: recompute conv (MXU is idle anyway) and apply scale/shift ---------
    B2 = pick_b(N)
    out_flat = pl.pallas_call(
        functools.partial(_apply_kernel, K=K, V=V, B=B2, TV_al=TV_al),
        grid=(N // B2,),
        in_specs=[
            pl.BlockSpec((B2, Cin, TVp_al), lambda n: (n, 0, 0)),
            pl.BlockSpec((Cout, K * Cin), lambda n: (0, 0)),
            pl.BlockSpec((Cout, 1), lambda n: (0, 0)),
            pl.BlockSpec((Cout, 1), lambda n: (0, 0)),
        ],
        out_specs=pl.BlockSpec((B2, Cout, TV_al), lambda n: (n, 0, 0)),
        out_shape=jax.ShapeDtypeStruct((N, Cout, TV_al), out_dtype),
        compiler_params=pltpu.CompilerParams(
            dimension_semantics=("parallel",),
            vmem_limit_bytes=_VMEM_LIMIT),
        cost_estimate=pl.CostEstimate(
            flops=conv_flops, transcendentals=0,
            bytes_accessed=(x_bytes + w_bytes + 2 * Cout * 4
                            + N * Cout * TV_al * out_itemsize)),
    )(x_b, w2, scale, shift)

    # slice off lane padding + reshape only (no transpose): -> (N, Cout, T_out, V) NCHW
    return out_flat[:, :, :TV].reshape(N, Cout, T_out, V)


def reference_forward(x, w, bias, gamma, beta, kernel_size=9, stride=1):
    """Pure-JAX reference (lax conv + training-mode BN) at the same bf16 operand precision."""
    pad = (kernel_size - 1) // 2
    y = jax.lax.conv_general_dilated(
        x.astype(jnp.bfloat16), w.astype(jnp.bfloat16),
        window_strides=(stride, 1), padding=((pad, pad), (0, 0)),
        dimension_numbers=("NCHW", "OIHW", "NCHW"),
        preferred_element_type=jnp.float32)
    y = y + bias.reshape(1, -1, 1, 1).astype(jnp.float32)
    mean = jnp.mean(y, axis=(0, 2, 3), keepdims=True)
    var = jnp.mean((y - mean) ** 2, axis=(0, 2, 3), keepdims=True)
    return ((y - mean) * jax.lax.rsqrt(var + EPS)
            * gamma.reshape(1, -1, 1, 1) + beta.reshape(1, -1, 1, 1))


if __name__ == "__main__":
    # small shapes consistent with the module: (N, C_in, T, V)
    N, Cin, Cout, T, V = 2, 4, 8, 16, 16
    K, stride = 9, 1

    key = jax.random.PRNGKey(0)
    kx, kw = jax.random.split(key)

    x = jax.random.normal(kx, (N, Cin, T, V), dtype=jnp.float32)

    # conv_init: kaiming_normal_(mode='fan_out') -> std = sqrt(2 / (Cout*K*1))
    fan_out = Cout * K * 1
    w = jax.random.normal(kw, (Cout, Cin, K, 1), dtype=jnp.float32) * jnp.sqrt(
        2.0 / fan_out)
    bias = jnp.zeros((Cout,), dtype=jnp.float32)      # conv_init -> bias = 0
    gamma = jnp.ones((Cout,), dtype=jnp.float32)      # bn_init(bn, 1)
    beta = jnp.zeros((Cout,), dtype=jnp.float32)

    out = unit_skip_forward(x, w, bias, gamma, beta, kernel_size=K, stride=stride)
    out = jax.block_until_ready(out)

    ref = reference_forward(x, w, bias, gamma, beta, kernel_size=K, stride=stride)
    assert out.shape == (N, Cout, T, V)
    assert jnp.allclose(out, ref, atol=1e-3, rtol=1e-3), "mismatch vs reference"

    print("KERNEL_OK")
</pallas_src>

<mosaic_0001>
module attributes {stable_mosaic.version = 11 : i64} {
  func.func @_stats_kernel(%arg0: i32, %arg1: i32, %arg2: memref<1x4x384xbf16, #tpu.memory_space<vmem>>, %arg3: memref<8x36xbf16, #tpu.memory_space<vmem>>, %arg4: memref<1x8x256xf32, #tpu.memory_space<vmem>>, %arg5: memref<1x8x256xf32, #tpu.memory_space<vmem>>) attributes {dimension_semantics = [#tpu.dimension_semantics<parallel>, #tpu.dimension_semantics<arbitrary>], iteration_bounds = array<i64: 2, 1>, scalar_prefetch = 0 : i64, scratch_operands = 0 : i64, tpu.core_type = #tpu.core_type<tc>, window_params = [{transform_indices = @transform_0, window_bounds = array<i64: 1, 4, 384>}, {pipeline_mode = #tpu.pipeline_mode<synchronous>, transform_indices = @transform_1, window_bounds = array<i64: 8, 36>}, {transform_indices = @transform_2, window_bounds = array<i64: 1, 8, 256>}, {transform_indices = @transform_3, window_bounds = array<i64: 1, 8, 256>}]} {
    %c0_i32 = arith.constant 0 : i32
    %0 = arith.cmpi eq, %arg1, %c0_i32 : i32
    %1 = arith.extui %0 : i1 to i32
    %c0_i32_0 = arith.constant 0 : i32
    %2 = arith.cmpi ne, %1, %c0_i32_0 : i32
    scf.if %2 {
      %cst_19 = arith.constant 0.000000e+00 : f32
      %34 = vector.broadcast %cst_19 : f32 to vector<8x256xf32>
      %c0_20 = arith.constant 0 : index
      %c0_21 = arith.constant 0 : index
      %c0_22 = arith.constant 0 : index
      %35 = vector.load %arg4[%c0_20, %c0_21, %c0_22] : memref<1x8x256xf32, #tpu.memory_space<vmem>>, vector<1x8x256xf32>
      %36 = vector.shape_cast %35 : vector<1x8x256xf32> to vector<8x256xf32>
      %37 = vector.shape_cast %34 : vector<8x256xf32> to vector<1x8x256xf32>
      tpu.vector_store %arg4[%c0_20, %c0_21, %c0_22], %37 {strides = array<i32>} : memref<1x8x256xf32, #tpu.memory_space<vmem>>, vector<1x8x256xf32>,
      %cst_23 = arith.constant 0.000000e+00 : f32
      %38 = vector.broadcast %cst_23 : f32 to vector<8x256xf32>
      %c0_24 = arith.constant 0 : index
      %c0_25 = arith.constant 0 : index
      %c0_26 = arith.constant 0 : index
      %39 = vector.load %arg5[%c0_24, %c0_25, %c0_26] : memref<1x8x256xf32, #tpu.memory_space<vmem>>, vector<1x8x256xf32>
      %40 = vector.shape_cast %39 : vector<1x8x256xf32> to vector<8x256xf32>
      %41 = vector.shape_cast %38 : vector<8x256xf32> to vector<1x8x256xf32>
      tpu.vector_store %arg5[%c0_24, %c0_25, %c0_26], %41 {strides = array<i32>} : memref<1x8x256xf32, #tpu.memory_space<vmem>>, vector<1x8x256xf32>,
    } else {
    }
    %c0 = arith.constant 0 : index
    %c0_1 = arith.constant 0 : index
    %3 = vector.load %arg3[%c0, %c0_1] : memref<8x36xbf16, #tpu.memory_space<vmem>>, vector<8x36xbf16>
    %cst = arith.constant 0.000000e+00 : f32
    %4 = vector.broadcast %cst : f32 to vector<8x256xf32>
    %cst_2 = arith.constant 0.000000e+00 : f32
    %5 = vector.broadcast %cst_2 : f32 to vector<8x256xf32>
    %c0_3 = arith.constant 0 : index
    %c0_4 = arith.constant 0 : index
    %c0_5 = arith.constant 0 : index
    %6 = vector.load %arg2[%c0_3, %c0_4, %c0_5] : memref<1x4x384xbf16, #tpu.memory_space<vmem>>, vector<1x4x384xbf16>
    %7 = vector.shape_cast %6 : vector<1x4x384xbf16> to vector<4x384xbf16>
    %8 = vector.extract_strided_slice %7 {offsets = [0, 0], sizes = [4, 256], strides = [1, 1]} : vector<4x384xbf16> to vector<4x256xbf16>
    %9 = vector.extract_strided_slice %7 {offsets = [0, 16], sizes = [4, 256], strides = [1, 1]} : vector<4x384xbf16> to vector<4x256xbf16>
    %10 = vector.extract_strided_slice %7 {offsets = [0, 32], sizes = [4, 256], strides = [1, 1]} : vector<4x384xbf16> to vector<4x256xbf16>
    %11 = vector.extract_strided_slice %7 {offsets = [0, 48], sizes = [4, 256], strides = [1, 1]} : vector<4x384xbf16> to vector<4x256xbf16>
    %12 = vector.extract_strided_slice %7 {offsets = [0, 64], sizes = [4, 256], strides = [1, 1]} : vector<4x384xbf16> to vector<4x256xbf16>
    %13 = vector.extract_strided_slice %7 {offsets = [0, 80], sizes = [4, 256], strides = [1, 1]} : vector<4x384xbf16> to vector<4x256xbf16>
    %14 = vector.extract_strided_slice %7 {offsets = [0, 96], sizes = [4, 256], strides = [1, 1]} : vector<4x384xbf16> to vector<4x256xbf16>
    %15 = vector.extract_strided_slice %7 {offsets = [0, 112], sizes = [4, 256], strides = [1, 1]} : vector<4x384xbf16> to vector<4x256xbf16>
    %16 = vector.extract_strided_slice %7 {offsets = [0, 128], sizes = [4, 256], strides = [1, 1]} : vector<4x384xbf16> to vector<4x256xbf16>
    %17 = tpu.concatenate %8, %9, %10, %11, %12, %13, %14, %15, %16 in 0 : vector<4x256xbf16>, vector<4x256xbf16>, vector<4x256xbf16>, vector<4x256xbf16>, vector<4x256xbf16>, vector<4x256xbf16>, vector<4x256xbf16>, vector<4x256xbf16>, vector<4x256xbf16> -> vector<36x256xbf16>
    %cst_6 = arith.constant dense<0.000000e+00> : vector<8x256xf32>
    %18 = tpu.matmul %3, %17, %cst_6 {dimension_numbers = #tpu.dot_dimension_numbers<[1], [0], [0], [1], [0, 0, 1, 1], [], []>} : vector<8x36xbf16>, vector<36x256xbf16>, vector<8x256xf32> -> vector<8x256xf32>
    %19 = arith.addf %4, %18 : vector<8x256xf32>
    %20 = arith.mulf %18, %18 : vector<8x256xf32>
    %21 = arith.addf %5, %20 : vector<8x256xf32>
    %c0_7 = arith.constant 0 : index
    %c0_8 = arith.constant 0 : index
    %c0_9 = arith.constant 0 : index
    %22 = vector.load %arg4[%c0_7, %c0_8, %c0_9] : memref<1x8x256xf32, #tpu.memory_space<vmem>>, vector<1x8x256xf32>
    %23 = vector.shape_cast %22 : vector<1x8x256xf32> to vector<8x256xf32>
    %24 = arith.addf %23, %19 : vector<8x256xf32>
    %c0_10 = arith.constant 0 : index
    %c0_11 = arith.constant 0 : index
    %c0_12 = arith.constant 0 : index
    %25 = vector.load %arg4[%c0_10, %c0_11, %c0_12] : memref<1x8x256xf32, #tpu.memory_space<vmem>>, vector<1x8x256xf32>
    %26 = vector.shape_cast %25 : vector<1x8x256xf32> to vector<8x256xf32>
    %27 = vector.shape_cast %24 : vector<8x256xf32> to vector<1x8x256xf32>
    tpu.vector_store %arg4[%c0_10, %c0_11, %c0_12], %27 {strides = array<i32>} : memref<1x8x256xf32, #tpu.memory_space<vmem>>, vector<1x8x256xf32>,
    %c0_13 = arith.constant 0 : index
    %c0_14 = arith.constant 0 : index
    %c0_15 = arith.constant 0 : index
    %28 = vector.load %arg5[%c0_13, %c0_14, %c0_15] : memref<1x8x256xf32, #tpu.memory_space<vmem>>, vector<1x8x256xf32>
    %29 = vector.shape_cast %28 : vector<1x8x256xf32> to vector<8x256xf32>
    %30 = arith.addf %29, %21 : vector<8x256xf32>
    %c0_16 = arith.constant 0 : index
    %c0_17 = arith.constant 0 : index
    %c0_18 = arith.constant 0 : index
    %31 = vector.load %arg5[%c0_16, %c0_17, %c0_18] : memref<1x8x256xf32, #tpu.memory_space<vmem>>, vector<1x8x256xf32>
    %32 = vector.shape_cast %31 : vector<1x8x256xf32> to vector<8x256xf32>
    %33 = vector.shape_cast %30 : vector<8x256xf32> to vector<1x8x256xf32>
    tpu.vector_store %arg5[%c0_16, %c0_17, %c0_18], %33 {strides = array<i32>} : memref<1x8x256xf32, #tpu.memory_space<vmem>>, vector<1x8x256xf32>,
    return
  }
  func.func @transform_0(%arg0: i32, %arg1: i32) -> (i32, i32, i32) {
    %c1_i32 = arith.constant 1 : i32
    %0 = arith.muli %arg0, %c1_i32 : i32
    %1 = arith.addi %0, %arg1 : i32
    %c0_i32 = arith.constant 0 : i32
    %c0_i32_0 = arith.constant 0 : i32
    %c0_i32_1 = arith.constant 0 : i32
    return %1, %c0_i32, %c0_i32_0 : i32, i32, i32
  }
  func.func @transform_1(%arg0: i32, %arg1: i32) -> (i32, i32) {
    %c0_i32 = arith.constant 0 : i32
    %c0_i32_0 = arith.constant 0 : i32
    %c0_i32_1 = arith.constant 0 : i32
    return %c0_i32, %c0_i32_0 : i32, i32
  }
  func.func @transform_2(%arg0: i32, %arg1: i32) -> (i32, i32, i32) {
    %c0_i32 = arith.constant 0 : i32
    %c0_i32_0 = arith.constant 0 : i32
    %c0_i32_1 = arith.constant 0 : i32
    return %arg0, %c0_i32, %c0_i32_0 : i32, i32, i32
  }
  func.func @transform_3(%arg0: i32, %arg1: i32) -> (i32, i32, i32) {
    %c0_i32 = arith.constant 0 : i32
    %c0_i32_0 = arith.constant 0 : i32
    %c0_i32_1 = arith.constant 0 : i32
    return %arg0, %c0_i32, %c0_i32_0 : i32, i32, i32
  }
}

</mosaic_0001>

<bundles_post_ra>
// kernel: tpu_custom_call.1
= control target key start
LH: loop header
LB: loop body
LE: loop exit
PB: predicated region body
PF: predicated region fallthrough
CT: control target
= control target key end

     0   :  { %9 = vsyncpa [#allocation3], 0  ;;  %s1115_s0 = inlined_call_operand.hbm [shape: bf16[2,4,384], index: 0, kind: input, shape index: {}]   ;;  %s1116_s1 = inlined_call_operand.hbm [shape: bf16[8,36], index: 1, kind: input, shape index: {}]   ;;  %s1117_s2 = inlined_call_operand.hbm [shape: f32[2,8,256], index: 2, kind: output, shape index: {0}]   ;;  %s1118_s3 = inlined_call_operand.hbm [shape: f32[2,8,256], index: 3, kind: output, shape index: {1}]  }
   0x1   :  { %11 = vsyncpa [#allocation3 + $0x1], 0 }
   0x2   :  { %12 = vsyncpa [#allocation6], 0 }
   0x3   :  { %13 = vsyncpa [#allocation4], 0 }
   0x4   :  { %15 = vsyncpa [#allocation4 + $0x1], 0 }
   0x5   :  { %16 = vsyncpa [#allocation9], 0 }
   0x6   :  { %18 = vsyncpa [#allocation9 + $0x1], 0  ;;  %s930_s12 = smov 0   ;;  %s932_s13 = smov 0  }
   0x7   :  { %s934_s14 = smov 0   ;;  %s936_s15 = smov 0  }
   0x8   :  { %s938_s16 = smov 0   ;;  %s940_s17 = smov 0  }
   0x9 LB: > { %s611_s18 = sadd.s32 4294967295, %s900_s17   ;;  %s612_s19 = sadd.s32 4294967294, %s900_s17   ;;  %s900_s17 = sphi %s940_s17, %s24_s17   ;;  %s896_s16 = sphi %s938_s16, %s1130_s16   ;;  %s892_s15 = sphi %s936_s15, %s1129_s15   ;;  %s888_s14 = sphi %s934_s14, %s1128_s14   ;;  %s884_s13 = sphi %s932_s13, %s1127_s13   ;;  %s880_s12 = sphi %s930_s12, %s1126_s12  }
   0xa   : > { %p58_p0 = scmp.ne.s32.totalorder %s884_s13, %s880_s12  ;;  %p964_p1 = scmp.eq.s32.totalorder %s611_s18, 0 }
   0xb   : > { %p968_p2 = scmp.eq.s32.totalorder %s611_s18, 1  ;;  %p109_p3 = scmp.eq.s32.totalorder %s612_s19, 1 }
   0xc   : > { %p974_p4 = por %p964_p1, %p58_p0  ;;  %p613_p5 = scmp.ge.s32.totalorder %s900_s17, 1 }
   0xd   : > { %p979_p6 = por %p109_p3, %p58_p0  ;;  %p142_p7 = scmp.lt.s32.totalorder %s900_s17, 3 }
   0xe   : > { %s154_s26 = sshll.u32 %s1116_s1, 4  ;;  %s902_s28 = smov [#allocation5]   ;;  %s155_s26 = int_to_ptr.hbm [resolvable:$true] %s154_s26 }
   0xf   : > { %p987_p8 = pnand %p613_p5, %p142_p7  ;;  %s156_s29 = sshll.u32 %s902_s28, 4  ;;  %s157_s29 = int_to_ptr.vmem [resolvable:$true] %s156_s29 }
  0x10   : > { %s36_s30 = sadd.s32 1, %s896_s16  ;;  %s45_s4 = sadd.s32 1, %s888_s14 }
  0x11   : > { %p646_p10 = pneg %p987_p8  ;;  %p38_p12 = scmp.ge.s32.totalorder %s36_s30, 2 }
  0x12   : > { %p52_p13 = scmp.ne.s32.totalorder %s888_s14, %s884_s13  ;;  %p53_p0 = scmp.eq.s32.totalorder %s900_s17, 0 }
  0x13   : > { %p647_p11 = pnand %p646_p10, %p964_p1  ;;  %s1132_s30 = smov (%p38_p12, %s36_s30), 0 }
  0x14   : > { %p54_p3 = por %p53_p0, %p52_p13  ;;  %p1005_p5 = por %p968_p2, %p52_p13 }
  0x15   : > { %649 = dma.hbm_to_vmem [thread:$0]  (!%p647_p11), %s155_s26, 64, %s157_s29, [#allocation6]  }
  0x16   : > { %s42_s6 = ssub.s32 %s896_s16, %s1132_s30  ;;  %p662_p7 = scmp.lt.s32.totalorder %s900_s17, 2 }
  0x17   : > { %p43_p9 = scmp.eq.s32.totalorder %s42_s6, 0  ;;  %s167_s7 = sand.u32 1, %s888_s14  }
  0x18   : > { %s633_s8 = smul.u32 6, %s167_s7  ;;  %p651_p10 = pnand %p662_p7, %p54_p3 }
  0x19   : > { %s1014_s9 = scalar_select %p43_p9, %s888_s14, %s45_s4  }
  0x1a   : > { %s634_s10 = smul.u32 6, %s896_s16  ;;  %s171_s11 = scalar_lea.vmem [#allocation2], %s633_s8 }
  0x1b   : > { %s181_s18 = sshll.u32 %s171_s11, 4  ;;  %s168_s26 = scalar_lea.sflag [#allocation3], %s167_s7  ;;  %s182_s18 = int_to_ptr.vmem [resolvable:$true] %s181_s18 }
  0x1c   : > { %s177_s25 = scalar_lea.hbm %s1115_s0, %s634_s10  ;;  %190 = sbr.rel (%p987_p8) target bundleno = 379 (0x17b), region = 28 }
  0x1d   : > { %s179_s21 = sshll.u32 %s177_s25, 4  ;;  %s1023_s28 = sand.u32 (!%p987_p8), 1, %s884_s13   ;;  %s180_s21 = int_to_ptr.hbm [resolvable:$true] %s179_s21 }
  0x1e   : > { %653 = dma.hbm_to_vmem [thread:$0]  (!%p651_p10), %s180_s21, 96, %s182_s18, %s168_s26  }
  0x1f   : > { %s635_s29 = smul.u32 (!%p987_p8), 6, %s1023_s28  ;;  %s193_s4 = scalar_lea.sflag (!%p987_p8), [#allocation3], %s1023_s28 }
  0x21   : > { %s196_s6 = scalar_lea.vmem [#allocation2], %s635_s29 }
  0x22   : > { %863 = dma.done.wait (%p974_p4), %s193_s4, 96  }
  0x23   : > { %865 = vsyncadd (%p974_p4), %s193_s4, 4294967200 }
  0x24   : > { %867 = dma.done.wait (%p964_p1), [#allocation6], 64  }
  0x25   : > { %869 = vsyncadd (%p964_p1), [#allocation6], 4294967232  ;;  %v241_v0 = vld [vmem:[%s196_s6] sm:$0x3f]  ;;  %s903_s27 = smov 112   ;;  %s904_s22 = smov 96  }
  0x26   : > { %243 = vst [vmem:[#allocation1] ss:$4 sm:$0xff] %v241_v0  ;;  %s905_s20 = smov 64   ;;  %s906_s7 = smov 48   ;;  %vm367_vm0 = vcmask 1041408   ;;  %vm310_vm1 = vcmask 523264  }
  0x27   : > { %s907_s8 = smov 32   ;;  %s908_s10 = smov 16   ;;  %vm344_vm2 = vcmask 261120   ;;  %vm327_vm3 = vcmask 392192   ;;  %vm361_vm4 = vcmask 130048   ;;  %vm260_vm5 = vcmask 916480  }
  0x28   : > { %s909_s11 = smov 80   ;;  %vm377_vm6 = vcmask 1045504   ;;  %vm372_vm7 = vcmask 1043456   ;;  %vm277_vm8 = vcmask 785408   ;;  %vm294_vm9 = vcmask 654336   ;;  %s631_s18 = sshll.u32 %s892_s15, 4 }
  0x29   : > { %vm400_vm10 = vcmask 293888   ;;  %s619_s19 = sshll.u32 %s1023_s28, 4  ;;  %s469_s21 = scalar_lea.hbm %s1117_s2, %s631_s18 }
  0x2a   : > { %s484_s4 = scalar_lea.hbm %s1118_s3, %s631_s18  ;;  %s222_s6 = scalar_lea.vmem [#allocation7], %s619_s19 }
  0x2b   : > { %s802_s24 = scalar_lea.hbm %s1117_s2, 32 }
  0x2d   : > { %v1035_v1 = vld.sshfl [vmem:[#allocation1] sm:$0xff pattern:$0x73625140]  ;;  %v1037_v2 = vld.sshfl [vmem:[#allocation1 + $0x8] sm:$0xff pattern:$0x73625140] }
  0x2e   : > { %247 = vst [vmem:[#allocation1 + $0x1] ss:$4 sm:$0xff] %v241_v0 }
  0x35   : > { %v250_v3 = vld.sshfl [vmem:[#allocation1 + $0x8] sm:$0xff pattern:$0x73625140]  ;;  %v248_v4 = vld.sshfl [vmem:[#allocation1] sm:$0xff pattern:$0x73625140] }
  0x36   : > { %256 = vrot.lane.b32.xlu1 %v250_v3, %s903_s27  ;;  %v252_v5 = vld.sshfl [vmem:[#allocation1 + $0x10] sm:$0xff pattern:$0x73625140]  ;;  %254 = vrot.lane.b32.xlu0 %v248_v4, %s903_s27 }
  0x37   : > { %264 = vst [vmem:[#allocation1 + $0x2] ss:$4 sm:$0xff] %v241_v0  ;;  %258 = vrot.lane.b32.xlu2 %v252_v5, %s903_s27  ;;  %s471_s27 = sshll.u32 %s222_s6, 4  ;;  %s472_s27 = int_to_ptr.vmem [resolvable:$true] %s471_s27 }
  0x3e   : > { %v267_v6 = vld.sshfl [vmem:[#allocation1 + $0x8] sm:$0xff pattern:$0x73625140]  ;;  %v265_v7 = vld.sshfl [vmem:[#allocation1] sm:$0xff pattern:$0x73625140] }
  0x3f   : > { %273 = vrot.lane.b32.xlu1 %v267_v6, %s904_s22  ;;  %v269_v8 = vld.sshfl [vmem:[#allocation1 + $0x10] sm:$0xff pattern:$0x73625140]  ;;  %271 = vrot.lane.b32.xlu0 %v265_v7, %s904_s22 }
  0x40   : > { %281 = vst [vmem:[#allocation1 + $0x3] ss:$4 sm:$0xff] %v241_v0  ;;  %275 = vrot.lane.b32.xlu2 %v269_v8, %s904_s22  ;;  %s473_s22 = sshll.u32 %s469_s21, 4  ;;  %s474_s22 = int_to_ptr.hbm [resolvable:$true] %s473_s22 }
  0x47   : > { %v282_v9 = vld.sshfl [vmem:[#allocation1] sm:$0xff pattern:$0x73625140]  ;;  %v284_v10 = vld.sshfl [vmem:[#allocation1 + $0x8] sm:$0xff pattern:$0x73625140] }
  0x48   : > { %v286_v11 = vld.sshfl [vmem:[#allocation1 + $0x10] sm:$0xff pattern:$0x73625140] }
  0x49   : > { %297 = vst [vmem:[#allocation1] ss:$4 sm:$0xff] %v241_v0 }
  0x50   : > { %v302_v12 = vld.sshfl [vmem:[#allocation1 + $0x10] sm:$0xff pattern:$0x73625140]  ;;  %v298_v13 = vld.sshfl [vmem:[#allocation1] sm:$0xff pattern:$0x73625140] }
  0x51   : > { %308 = vrot.lane.b32.xlu1 %v302_v12, %s905_s20  ;;  %304 = vrot.lane.b32.xlu0 %v298_v13, %s905_s20  ;;  %v300_v14 = vld.sshfl [vmem:[#allocation1 + $0x8] sm:$0xff pattern:$0x73625140] }
  0x52   : > { %314 = vst [vmem:[#allocation1 + $0x1] ss:$4 sm:$0xff] %v241_v0 }
  0x59   : > { %306 = vrot.lane.b32.xlu0 %v300_v14, %s905_s20  ;;  %v319_v15 = vld.sshfl [vmem:[#allocation1 + $0x10] sm:$0xff pattern:$0x73625140]  ;;  %v315_v16 = vld.sshfl [vmem:[#allocation1] sm:$0xff pattern:$0x73625140] }
  0x5a   : > { %321 = vrot.lane.b32.xlu1 %v315_v16, %s906_s7  ;;  %v317_v17 = vld.sshfl [vmem:[#allocation1 + $0x8] sm:$0xff pattern:$0x73625140]  ;;  %s229_s20 = scalar_lea.vmem [#allocation8], %s619_s19 }
  0x5b   : > { %323 = vrot.lane.b32.xlu2 %v317_v17, %s906_s7  ;;  %331 = vst [vmem:[#allocation1 + $0x2] ss:$4 sm:$0xff] %v241_v0  ;;  %s486_s15 = sshll.u32 %s229_s20, 4  ;;  %s1063_s15 = int_to_ptr.vmem [resolvable:$true] %s486_s15 }
  0x62   : > { %v336_v18 = vld.sshfl [vmem:[#allocation1 + $0x10] sm:$0xff pattern:$0x73625140]  ;;  %v334_v19 = vld.sshfl [vmem:[#allocation1 + $0x8] sm:$0xff pattern:$0x73625140] }
  0x63   : > { %340 = vrot.lane.b32.xlu1 %v334_v19, %s907_s8  ;;  %v332_v20 = vld.sshfl [vmem:[#allocation1] sm:$0xff pattern:$0x73625140]  ;;  %325 = vrot.lane.b32.xlu2 %v319_v15, %s906_s7  ;;  %s488_s7 = sshll.u32 %s484_s4, 4  ;;  %s1065_s7 = int_to_ptr.hbm [resolvable:$true] %s488_s7 }
  0x64   : > { %338 = vrot.lane.b32.xlu0 %v332_v20, %s907_s8  ;;  %348 = vst [vmem:[#allocation1 + $0x3] ss:$4 sm:$0xff] %v241_v0 }
  0x6b   : > { %v351_v21 = vld.sshfl [vmem:[#allocation1 + $0x8] sm:$0xff pattern:$0x73625140]  ;;  %v349_v22 = vld.sshfl [vmem:[#allocation1] sm:$0xff pattern:$0x73625140]  ;;  %342 = vrot.lane.b32.xlu2 %v336_v18, %s907_s8 }
  0x6c   : > { %357 = vrot.lane.b32.xlu1 %v351_v21, %s908_s10  ;;  %355 = vrot.lane.b32.xlu0 %v349_v22, %s908_s10  ;;  %v353_v23 = vld.sshfl [vmem:[#allocation1 + $0x10] sm:$0xff pattern:$0x73625140]  ;;  %s453_s8 = scalar_lea.sflag [#allocation4], %s1023_s28 }
  0x6d   : > { %364 = vst [vmem:[#allocation1] ss:$4 sm:$0xff] %v241_v0 }
  0x73   : > { %359 = vrot.lane.b32.xlu2 %v353_v23, %s908_s10  ;;  %s796_s10 = sshra.s32 %s474_s22, 4  ;;  %s797_s10 = int_to_ptr.hbm [resolvable:$true] %s796_s10 }
  0x74   : > { %290 = vrot.lane.b32.xlu1 %v284_v10, %s909_s11  ;;  %288 = vrot.lane.b32.xlu0 %v282_v9, %s909_s11  ;;  %v365_v28 = vld.sshfl [vmem:[#allocation1 + $0x8] sm:$0xff pattern:$0x73625140]  ;;  %v366_v29 = vld.sshfl [vmem:[#allocation1 + $0x10] sm:$0xff pattern:$0x73625140]  ;;  %p803_p8 = scmp.lt.s32.totalorder %s797_s10, %s1117_s2 }
  0x75   : > { %v404_v30 = vsel %vm367_vm0, %v365_v28, 0  ;;  %v406_v31 = vsel %vm367_vm0, %v366_v29, 0 }
  0x76   : > { %413 = vmatpush.bf16.msra.mxu0 %v404_v30  ;;  %426 = vmatpush.bf16.msra.mxu1 %v406_v31 }
  0x7b   : > { %292 = vrot.lane.b32.xlu2 %v286_v11, %s909_s11  ;;  %s798_s11 = scalar_lea.hbm %s797_s10, 16 }
  0x7c   : > { %p799_p1 = scmp.ne.s32.totalorder %s797_s10, %s798_s11  ;;  %p804_p9 = scmp.lt.s32.totalorder %s802_s24, %s798_s11 }
  0x7e   : > { %p800_p2 = pnand %p799_p1, %p1005_p5  ;;  %p805_p11 = por %p804_p9, %p803_p8 }
  0x80   : > { %p801_p4 = pneg %p800_p2 }
  0x82   : > { %p806_p12 = pnand %p805_p11, %p801_p4 }
  0x91   : > { %v259_v24 = vpop.permute.xlu2 %258 }
  0x9a   : > { %v276_v27 = vpop.permute.xlu2 %275 }
  0xa8   : > { %v257_v25 = vpop.permute.xlu1 %256  ;;  %v255_v26 = vpop.permute.xlu0 %254 }
  0xa9   : > { %v262_v58 = vsel %vm260_vm5, %v257_v25, %v259_v24  ;;  %v261_v61 = vsel %vm260_vm5, %v255_v26, %v257_v25 }
  0xaa   : > { %v371_v62 = vsel %vm367_vm0, %v1037_v2, %v262_v58  ;;  %v369_v63 = vsel %vm367_vm0, %v1035_v1, %v261_v61  ;;  %v240_v1 = vld [vmem:[#allocation5] sm:$0xf] }
  0xb1   : > { %v274_v32 = vpop.permute.xlu1 %273  ;;  %v272_v33 = vpop.permute.xlu0 %271 }
  0xb2   : > { %v279_v0 = vsel %vm277_vm8, %v274_v32, %v276_v27  ;;  %v278_v3 = vsel %vm277_vm8, %v272_v33, %v274_v32 }
  0xb3   : > { %v374_v9 = vsel %vm372_vm7, %v369_v63, %v278_v3  ;;  %v376_v10 = vsel %vm372_vm7, %v371_v62, %v279_v0 }
  0xb5   : > { %v324_v34 = vpop.permute.xlu2 %323 }
  0xbd   : > { %v326_v37 = vpop.permute.xlu2 %325 }
  0xbe   : > { %v329_v49 = vsel %vm327_vm3, %v324_v34, %v326_v37 }
  0xc3   : > { %v309_v35 = vpop.permute.xlu1 %308  ;;  %v305_v36 = vpop.permute.xlu0 %304 }
  0xc5   : > { %v343_v40 = vpop.permute.xlu2 %342 }
  0xcb   : > { %v307_v38 = vpop.permute.xlu0 %306 }
  0xcc   : > { %v322_v39 = vpop.permute.xlu1 %321  ;;  %v311_v44 = vsel %vm310_vm1, %v305_v36, %v307_v38  ;;  %v312_v45 = vsel %vm310_vm1, %v307_v38, %v309_v35 }
  0xcd   : > { %v360_v43 = vpop.permute.xlu2 %359  ;;  %v328_v46 = vsel %vm327_vm3, %v322_v39, %v324_v34  ;;  %v389_v50 = vsel %vm367_vm0, %v312_v45, %v329_v49 }
  0xce   : > { %v386_v51 = vsel %vm367_vm0, %v311_v44, %v328_v46 }
  0xd5   : > { %v341_v41 = vpop.permute.xlu1 %340  ;;  %v293_v4 = vpop.permute.xlu2 %292 }
  0xd6   : > { %v339_v42 = vpop.permute.xlu0 %338  ;;  %v346_v47 = vsel %vm344_vm2, %v341_v41, %v343_v40 }
  0xd7   : > { %v345_v48 = vsel %vm344_vm2, %v339_v42, %v341_v41  ;;  %v393_v57 = vsel %vm372_vm7, %v389_v50, %v346_v47 }
  0xd8   : > { %v391_v56 = vsel %vm372_vm7, %v386_v51, %v345_v48 }
  0xde   : > { %v358_v52 = vpop.permute.xlu1 %357  ;;  %v356_v53 = vpop.permute.xlu0 %355 }
  0xdf   : > { %v363_v54 = vsel %vm361_vm4, %v358_v52, %v360_v43  ;;  %v362_v55 = vsel %vm361_vm4, %v356_v53, %v358_v52 }
  0xe0   : > { %v395_v59 = vsel %vm377_vm6, %v391_v56, %v362_v55  ;;  %v398_v60 = vsel %vm377_vm6, %v393_v57, %v363_v54 }
  0xe1   : > { %414 = vmatpush.bf16.msra.mxu0 %v395_v59  ;;  %427 = vmatpush.bf16.msra.mxu1 %v398_v60 }
  0xe6   : > { %v291_v5 = vpop.permute.xlu1 %290  ;;  %v289_v6 = vpop.permute.xlu0 %288 }
  0xe7   : > { %v296_v7 = vsel %vm294_vm9, %v291_v5, %v293_v4  ;;  %v295_v8 = vsel %vm294_vm9, %v289_v6, %v291_v5 }
  0xe8   : > { %v379_v11 = vsel %vm377_vm6, %v374_v9, %v295_v8  ;;  %v382_v2 = vsel %vm377_vm6, %v376_v10, %v296_v7 }
  0xe9   : > { %415 = vmatpush.bf16.msra.mxu0 %v379_v11  ;;  %428 = vmatpush.bf16.msra.mxu1 %v382_v2 }
  0xec   : > { %621 = vmatmul.msk.bf16.vlgmr.msra.gmra.mxu0 %vm400_vm10, %v240_v1  ;;  %622 = vmatmul.msk.bf16.vlgmr.msra.gmra.mxu1 %vm400_vm10, %v240_v1 }
 0x169   : > { %v417_v12 = vpop.f32.mrf.mxu0  ;;  %v430_v13 = vpop.f32.mrf.mxu1 }
 0x16a   : > { %v436_v14 = vmul.f32 %v417_v12, %v417_v12  ;;  %v437_v15 = vmul.f32 %v430_v13, %v430_v13  ;;  %444 = vst [vmem:[%s222_s6] sm:$0xff] %v417_v12 }
 0x16b   : > { %445 = vst [vmem:[%s222_s6 + $0x8] sm:$0xff] %v430_v13 }
 0x16c   : > { %450 = vst [vmem:[%s229_s20] sm:$0xff] %v436_v14 }
 0x16d   : > { %809 = shalt.err (!%p806_p12)
}
 0x16e   : > { %642 = dma.vmem_to_hbm [thread:$0]  (%p1005_p5), %s472_s27, 256, %s474_s22, %s453_s8   ;;  %451 = vst [vmem:[%s229_s20 + $0x8] sm:$0xff] %v437_v15 }
 0x16f   : > { %s458_s26 = scalar_lea.sflag [#allocation9], %s1023_s28  ;;  %s824_s29 = sshra.s32 %s1065_s7, 4  ;;  %s825_s29 = int_to_ptr.hbm [resolvable:$true] %s824_s29 }
 0x170   : > { %s826_s4 = scalar_lea.hbm %s825_s29, 16  ;;  %s830_s11 = scalar_lea.hbm %s1118_s3, 32 }
 0x171   : > { %p827_p13 = scmp.ne.s32.totalorder %s825_s29, %s826_s4  ;;  %p831_p7 = scmp.lt.s32.totalorder %s825_s29, %s1118_s3 }
 0x172   : > { %p832_p10 = scmp.lt.s32.totalorder %s830_s11, %s826_s4 }
 0x173   : > { %p828_p0 = pnand %p827_p13, %p1005_p5 }
 0x174   : > { %p833_p1 = por %p832_p10, %p831_p7 }
 0x175   : > { %p829_p3 = pneg %p828_p0 }
 0x177   : > { %p834_p2 = pnand %p833_p1, %p829_p3 }
 0x179   : > { %837 = shalt.err (!%p834_p2)
}
 0x17a   : > { %643 = dma.vmem_to_hbm [thread:$0]  (%p1005_p5), %s1063_s15, 256, %s1065_s7, %s458_s26   ;;  %v419_v16 = vpop.f32.mrf.mxu0  ;;  %v432_v17 = vpop.f32.mrf.mxu1 }
 0x17b PF: > { %s500_s28 = sand.u32 1, %s880_s12   ;;  %p1125_p4 = scmp.ge.s32.totalorder %s900_s17, 2 }
 0x17c   : > { %s501_s27 = scalar_lea.sflag [#allocation4], %s500_s28 }
 0x17d   : > { %p655_p8 = pnand %p1125_p4, %p979_p6 }
 0x17f   : > { %p656_p9 = pneg %p655_p8 }
 0x181   : > { %871 = dma.done.wait (%p656_p9), %s501_s27, 256  }
 0x182   : > { %873 = vsyncadd (%p656_p9), %s501_s27, 4294967040  ;;  %s511_s22 = scalar_lea.sflag [#allocation9], %s500_s28 }
 0x183   : > { %875 = dma.done.wait (%p656_p9), %s511_s22, 256  }
 0x184   : > { %877 = vsyncadd (%p656_p9), %s511_s22, 4294967040  ;;  %s24_s17 = sadd.s32 1, %s900_s17   ;;  %s1126_s12 = smov %s884_s13 }
 0x185   : > { %p21_p5 = scmp.ge.s32.totalorder %s24_s17, 4   ;;  %s1127_s13 = smov %s888_s14 }
 0x186   : > { %s1128_s14 = smov %s1014_s9  ;;  %s1129_s15 = smov %s896_s16 }
 0x187   : > { %s1130_s16 = smov %s1132_s30  ;;  %23 = sbr.rel (!%p21_p5) target bundleno = 9 (0x9), region = 104 }
 0x18c   :  { %517 = vsyncpa [#allocation3], 1 }
 0x18d   :  { %519 = vsyncpa [#allocation3 + $0x1], 1 }
 0x18e   :  { %520 = vsyncpa [#allocation6], 1 }
 0x18f   :  { %521 = vsyncpa [#allocation4], 1 }
 0x190   :  { %523 = vsyncpa [#allocation4 + $0x1], 1 }
 0x191   :  { %524 = vsyncpa [#allocation9], 1 }
 0x192   :  { %526 = vsyncpa [#allocation9 + $0x1], 1 }

</bundles_post_ra>
